<compile_context>
chip_gen: v7x
topology: tpu7x:2x2x1
jax: 0.10.0
libtpu: 0.0.40
codegen_flags: <defaults>
</compile_context>

<pallas_src>
import functools

import jax
import jax.numpy as jnp
import numpy as np
from jax import lax
from jax.experimental import pallas as pl
from jax.experimental.pallas import tpu as pltpu


def _ls_ce_kernel(x_ref, tgt_ref, out_ref, *, smoothing, n_rows, tile_m):
    """One row-tile: partial sum of label-smoothed CE losses (no cross-tile state)."""
    i = pl.program_id(0)

    x = x_ref[...].astype(jnp.float32)            # (TM, C)
    tgt = tgt_ref[...]                            # (TM, 1) int32
    tm, c = x.shape

    # log-sum-exp over classes (lane dim); logprobs are never materialized.
    m = jnp.max(x, axis=-1, keepdims=True)                               # (TM, 1)
    lse = jnp.log(jnp.sum(jnp.exp(x - m), axis=-1, keepdims=True))       # (TM, 1)
    log_z = m + lse                                                      # (TM, 1)

    cols = lax.broadcasted_iota(jnp.int32, (tm, c), 1)
    x_t = jnp.sum(jnp.where(cols == tgt, x, 0.0), axis=-1, keepdims=True)  # x[target]
    sum_x = jnp.sum(x, axis=-1, keepdims=True)

    nll_loss = log_z - x_t                          # -logprobs[target]
    smooth_loss = log_z - sum_x * (1.0 / c)         # -mean(logprobs)

    confidence = 1.0 - smoothing
    row_loss = confidence * nll_loss + smoothing * smooth_loss           # (TM, 1)

    # Mask rows that are padding (global row index >= n_rows).
    rows = i * tile_m + lax.broadcasted_iota(jnp.int32, (tm, 1), 0)
    row_loss = jnp.where(rows < n_rows, row_loss, 0.0)

    out_ref[0, 0] = jnp.sum(row_loss)


def _choose_tile_m(n, c, itemsize):
    """Largest row tile fitting ~8 MiB/block (double-buffered: safe on v5e/v6e/v7x)."""
    row_align = max(8, (8 * 4) // itemsize)         # 8 for f32, 16 for bf16
    block_budget = 8 * 1024 * 1024
    tm = block_budget // max(1, c * itemsize)
    tm = max(row_align, min(tm, 2048))
    n_up = ((n + row_align - 1) // row_align) * row_align
    tm = min(tm, n_up)
    tm = max(row_align, (tm // row_align) * row_align)
    return tm


def label_smoothing_cross_entropy(x, target, smoothing=0.1, tile_m=None):
    n, c = x.shape
    itemsize = jnp.dtype(x.dtype).itemsize
    if tile_m is None:
        tile_m = _choose_tile_m(n, c, itemsize)

    num_tiles = pl.cdiv(n, tile_m)
    n_pad = num_tiles * tile_m
    if n_pad != n:
        x = jnp.pad(x, ((0, n_pad - n), (0, 0)))
        target = jnp.pad(target, (0, n_pad - n))
    tgt = target.astype(jnp.int32).reshape(n_pad, 1)

    kernel = functools.partial(
        _ls_ce_kernel, smoothing=float(smoothing), n_rows=n, tile_m=tile_m
    )

    cost = pl.CostEstimate(
        flops=5 * n * c,
        transcendentals=n * c,
        bytes_accessed=n * c * itemsize + n * 4 + num_tiles * 4,
    )

    partials = pl.pallas_call(
        kernel,
        out_shape=jax.ShapeDtypeStruct((num_tiles, 1), jnp.float32),
        grid_spec=pltpu.PrefetchScalarGridSpec(
            num_scalar_prefetch=0,
            grid=(num_tiles,),
            in_specs=[
                pl.BlockSpec((tile_m, c), lambda i: (i, 0)),   # logits tile
                pl.BlockSpec((tile_m, 1), lambda i: (i, 0)),   # target indices tile
            ],
            out_specs=pl.BlockSpec(
                (1, 1), lambda i: (i, 0), memory_space=pltpu.MemorySpace.SMEM
            ),
        ),
        compiler_params=pltpu.CompilerParams(
            dimension_semantics=("parallel",),          # no cross-tile state
            vmem_limit_bytes=48 * 1024 * 1024,
        ),
        cost_estimate=cost,
    )(x, tgt)

    return jnp.sum(partials) / jnp.float32(n)


def _reference(x, target, smoothing=0.1):
    confidence = 1.0 - smoothing
    logprobs = jax.nn.log_softmax(x.astype(jnp.float32), axis=-1)
    nll = -jnp.take_along_axis(logprobs, target[:, None], axis=-1)[:, 0]
    smooth = -jnp.mean(logprobs, axis=-1)
    return jnp.mean(confidence * nll + smoothing * smooth)


if __name__ == "__main__":
    key = jax.random.PRNGKey(0)
    kx, kt, kx2, kt2 = jax.random.split(key, 4)

    # Case 1: aligned shapes, single tile.
    N, C = 16, 128
    x = jax.random.normal(kx, (N, C), dtype=jnp.float32)
    target = jax.random.randint(kt, (N,), 0, C, dtype=jnp.int32)
    loss = jax.block_until_ready(label_smoothing_cross_entropy(x, target, 0.1))
    ref = _reference(x, target, 0.1)
    np.testing.assert_allclose(np.asarray(loss), np.asarray(ref), rtol=1e-5, atol=1e-5)

    # Case 2: ragged N with forced small tile -> multi-tile parallel grid + padding mask.
    N2, C2 = 20, 128
    x2 = jax.random.normal(kx2, (N2, C2), dtype=jnp.float32)
    target2 = jax.random.randint(kt2, (N2,), 0, C2, dtype=jnp.int32)
    loss2 = jax.block_until_ready(
        label_smoothing_cross_entropy(x2, target2, 0.1, tile_m=8)
    )
    ref2 = _reference(x2, target2, 0.1)
    np.testing.assert_allclose(np.asarray(loss2), np.asarray(ref2), rtol=1e-5, atol=1e-5)

    print("KERNEL_OK")
</pallas_src>

<mosaic_0001>
module attributes {stable_mosaic.version = 11 : i64} {
  func.func @_ls_ce_kernel(%arg0: i32, %arg1: memref<16x128xf32, #tpu.memory_space<vmem>>, %arg2: memref<16x1xi32, #tpu.memory_space<vmem>>, %arg3: memref<1x1xf32, #tpu.memory_space<smem>>) attributes {dimension_semantics = [#tpu.dimension_semantics<parallel>], iteration_bounds = array<i64: 1>, scalar_prefetch = 0 : i64, scratch_operands = 0 : i64, tpu.core_type = #tpu.core_type<tc>, window_params = [{transform_indices = @transform_0, window_bounds = array<i64: 16, 128>}, {transform_indices = @transform_1, window_bounds = array<i64: 16, 1>}, {transform_indices = @transform_2, window_bounds = array<i64: 1, 1>}]} {
    %c0 = arith.constant 0 : index
    %c0_0 = arith.constant 0 : index
    %0 = vector.load %arg1[%c0, %c0_0] : memref<16x128xf32, #tpu.memory_space<vmem>>, vector<16x128xf32>
    %c0_1 = arith.constant 0 : index
    %c0_2 = arith.constant 0 : index
    %1 = vector.load %arg2[%c0_1, %c0_2] : memref<16x1xi32, #tpu.memory_space<vmem>>, vector<16x1xi32>
    %cst = arith.constant dense<0xFF800000> : vector<16xf32>
    %2 = vector.multi_reduction <maximumf>, %0, %cst [1] : vector<16x128xf32> to vector<16xf32>
    %3 = vector.shape_cast %2 : vector<16xf32> to vector<16x1xf32>
    %4 = vector.broadcast %3 : vector<16x1xf32> to vector<16x128xf32>
    %5 = arith.subf %0, %4 : vector<16x128xf32>
    %6 = math.exp %5 : vector<16x128xf32>
    %cst_3 = arith.constant dense<0.000000e+00> : vector<16xf32>
    %7 = vector.multi_reduction <add>, %6, %cst_3 [1] : vector<16x128xf32> to vector<16xf32>
    %8 = vector.shape_cast %7 : vector<16xf32> to vector<16x1xf32>
    %9 = math.log %8 : vector<16x1xf32>
    %10 = arith.addf %3, %9 : vector<16x1xf32>
    %11 = tpu.iota {dimensions = array<i32: 1>} : vector<16x128xi32>
    %12 = vector.broadcast %1 : vector<16x1xi32> to vector<16x128xi32>
    %13 = arith.cmpi eq, %11, %12 : vector<16x128xi32>
    %cst_4 = arith.constant 0.000000e+00 : f32
    %14 = vector.broadcast %cst_4 : f32 to vector<16x128xf32>
    %15 = arith.select %13, %0, %14 : vector<16x128xi1>, vector<16x128xf32>
    %cst_5 = arith.constant dense<0.000000e+00> : vector<16xf32>
    %16 = vector.multi_reduction <add>, %15, %cst_5 [1] : vector<16x128xf32> to vector<16xf32>
    %17 = vector.shape_cast %16 : vector<16xf32> to vector<16x1xf32>
    %cst_6 = arith.constant dense<0.000000e+00> : vector<16xf32>
    %18 = vector.multi_reduction <add>, %0, %cst_6 [1] : vector<16x128xf32> to vector<16xf32>
    %19 = vector.shape_cast %18 : vector<16xf32> to vector<16x1xf32>
    %20 = arith.subf %10, %17 : vector<16x1xf32>
    %cst_7 = arith.constant 7.812500e-03 : f32
    %21 = vector.broadcast %cst_7 : f32 to vector<16x1xf32>
    %22 = arith.mulf %19, %21 : vector<16x1xf32>
    %23 = arith.subf %10, %22 : vector<16x1xf32>
    %cst_8 = arith.constant 0.899999976 : f32
    %24 = vector.broadcast %cst_8 : f32 to vector<16x1xf32>
    %25 = arith.mulf %24, %20 : vector<16x1xf32>
    %cst_9 = arith.constant 1.000000e-01 : f32
    %26 = vector.broadcast %cst_9 : f32 to vector<16x1xf32>
    %27 = arith.mulf %26, %23 : vector<16x1xf32>
    %28 = arith.addf %25, %27 : vector<16x1xf32>
    %c16_i32 = arith.constant 16 : i32
    %29 = arith.muli %arg0, %c16_i32 : i32
    %30 = tpu.iota {dimensions = array<i32: 0>} : vector<16x1xi32>
    %31 = vector.broadcast %29 : i32 to vector<16x1xi32>
    %32 = arith.addi %31, %30 : vector<16x1xi32>
    %c16_i32_10 = arith.constant 16 : i32
    %33 = vector.broadcast %c16_i32_10 : i32 to vector<16x1xi32>
    %34 = arith.cmpi slt, %32, %33 : vector<16x1xi32>
    %cst_11 = arith.constant 0.000000e+00 : f32
    %35 = vector.broadcast %cst_11 : f32 to vector<16x1xf32>
    %36 = arith.select %34, %28, %35 : vector<16x1xi1>, vector<16x1xf32>
    %37 = vector.shape_cast %36 : vector<16x1xf32> to vector<1x16x1xf32>
    %cst_12 = arith.constant dense<0.000000e+00> : vector<1xf32>
    %38 = vector.multi_reduction <add>, %37, %cst_12 [1, 2] : vector<1x16x1xf32> to vector<1xf32>
    %39 = vector.shape_cast %38 : vector<1xf32> to vector<1x1x1xf32>
    %40 = vector.extract %39[0, 0, 0] : f32 from vector<1x1x1xf32>
    %c0_13 = arith.constant 0 : index
    %c0_14 = arith.constant 0 : index
    %41 = memref.load %arg3[%c0_13, %c0_14] : memref<1x1xf32, #tpu.memory_space<smem>>
    memref.store %40, %arg3[%c0_13, %c0_14] : memref<1x1xf32, #tpu.memory_space<smem>>
    return
  }
  func.func @transform_0(%arg0: i32) -> (i32, i32) {
    %c0_i32 = arith.constant 0 : i32
    %c0_i32_0 = arith.constant 0 : i32
    return %arg0, %c0_i32 : i32, i32
  }
  func.func @transform_1(%arg0: i32) -> (i32, i32) {
    %c0_i32 = arith.constant 0 : i32
    %c0_i32_0 = arith.constant 0 : i32
    return %arg0, %c0_i32 : i32, i32
  }
  func.func @transform_2(%arg0: i32) -> (i32, i32) {
    %c0_i32 = arith.constant 0 : i32
    %c0_i32_0 = arith.constant 0 : i32
    return %arg0, %c0_i32 : i32, i32
  }
}

</mosaic_0001>

<bundles_post_ra>
// kernel: tpu_custom_call.1
= control target key start
LH: loop header
LB: loop body
LE: loop exit
PB: predicated region body
PF: predicated region fallthrough
CT: control target
= control target key end

     0   :  { %v133_v2 = vmov 0   ;;  %s174_s0 = inlined_call_operand.vmem [shape: f32[16,128], index: 0, kind: input, shape index: {}]   ;;  %s175_s1 = inlined_call_operand.vmem [shape: s32[16,1], index: 1, kind: input, shape index: {}]   ;;  %s176_s2 = inlined_call_operand.hbm [shape: f32[1,1], index: 2, kind: output, shape index: {}]  }
   0x1   :  { %v12_v0 = vld [vmem:[%s174_s0] sm:$0xff]  ;;  %111 = vset.pattern.permute.xlu1 %v133_v2 }
   0x2   :  { %v14_v1 = vld [vmem:[%s175_s1] sm:$0xff]  ;;  %16 = vmax.xlane.f32.xlu0 %v12_v0 }
   0x3   :  { %7 = vsyncpa [#allocation3], 0  ;;  %v13_v3 = vld [vmem:[%s174_s0 + $0x8] sm:$0xff]  ;;  %39 = vperm.xlu1 %111, %v14_v1   ;;  %112 = vset.pattern.permute.xlu0 %v133_v2  ;;  %v36_v11 = vlaneseq  ;;  %vm79_vm2 = vcmask 7168   ;;  %s121_s18 = scalar_lea.hbm %s176_s2, 16 }
   0x4   :  { %v15_v4 = vld [vmem:[%s175_s1 + $0x8] sm:$0xff]  ;;  %p122_p0 = scmp.ne.s32.totalorder %s176_s2, %s121_s18  ;;  %p125_p1 = scmp.lt.u32.totalorder %s121_s18, %s176_s2 }
   0x5   :  { %v37_v14 = vand.u32 127, %v36_v11 }
   0x6   :  { %18 = vmax.xlane.f32.xlu0 %v13_v3  ;;  %p127_p2 = pnand %p125_p1, %p122_p0 }
   0x7   :  { %42 = vperm.xlu1 %111, %v15_v4  }
  0x82   :  { %v40_v13 = vpop.permute.xlu1 %39 }
  0x83   :  { %vm44_vm0 = vcmp.eq.s32.totalorder %v37_v14, %v40_v13 }
  0x84   :  { %v46_v17 = vsel %vm44_vm0, %v12_v0, 0.0 }
  0x86   :  { %v43_v16 = vpop.permute.xlu1 %42 }
  0x87   :  { %vm45_vm1 = vcmp.eq.s32.totalorder %v37_v14, %v43_v16 }
  0x88   :  { %v47_v18 = vsel %vm45_vm1, %v13_v3, 0.0 }
  0x8f   :  { %v17_v5 = vpop.xlane.xlu0 %16 }
  0x90   :  { %v20_v6 = vsub.f32 %v12_v0, %v17_v5 }
  0x92   :  { %v22_v7 = vmul.f32 1.442695, %v20_v6 }
  0x93   :  { %v19_v8 = vpop.xlane.xlu0 %18 }
  0x94   :  { %113 = vpow2.f32 %v22_v7  ;;  %v21_v9 = vsub.f32 %v13_v3, %v19_v8 }
  0x96   :  { %v24_v10 = vmul.f32 1.442695, %v21_v9 }
  0x98   :  { %115 = vpow2.f32 %v24_v10 }
  0x9e   :  { %v114_v12 = vpop.eup %113 }
  0x9f   :  { %26 = vadd.xlane.f32.xlu0 %v114_v12 }
  0xa2   :  { %v116_v15 = vpop.eup %115 }
  0xa3   :  { %52 = vadd.xlane.f32.xlu0 %v12_v0  ;;  %28 = vadd.xlane.f32.xlu1 %v116_v15 }
  0xa7   :  { %54 = vadd.xlane.f32.xlu0 %v13_v3 }
  0xab   :  { %48 = vadd.xlane.f32.xlu0 %v46_v17 }
  0xaf   :  { %50 = vadd.xlane.f32.xlu0 %v47_v18 }
 0x12c   :  { %v27_v19 = vpop.xlane.xlu0 %26 }
 0x12d   :  { %117 = vlog2.f32 %v27_v19 }
 0x130   :  { %v29_v20 = vpop.xlane.xlu1 %28  ;;  %v53_v21 = vpop.xlane.xlu0 %52 }
 0x131   :  { %119 = vlog2.f32 %v29_v20  ;;  %v58_v27 = vmul.f32 0.0078125, %v53_v21 }
 0x134   :  { %v55_v22 = vpop.xlane.xlu0 %54 }
 0x135   :  { %v59_v34 = vmul.f32 0.0078125, %v55_v22 }
 0x137   :  { %v118_v23 = vpop.eup %117 }
 0x138   :  { %v31_v24 = vmul.f32 0.6931472, %v118_v23  ;;  %v49_v25 = vpop.xlane.xlu0 %48 }
 0x13a   :  { %v34_v26 = vadd.f32 %v31_v24, %v17_v5 }
 0x13b   :  { %v120_v28 = vpop.eup %119 }
 0x13c   :  { %v33_v29 = vmul.f32 0.6931472, %v120_v28  ;;  %v60_v30 = vsub.f32 %v34_v26, %v58_v27  ;;  %v56_v31 = vsub.f32 %v34_v26, %v49_v25  ;;  %v51_v36 = vpop.xlane.xlu0 %50 }
 0x13e   :  { %v64_v32 = vmul.f32 0.1, %v60_v30  ;;  %v35_v33 = vadd.f32 %v33_v29, %v19_v8  ;;  %v62_v35 = vmul.f32 0.9, %v56_v31 }
 0x140   :  { %v61_v37 = vsub.f32 %v35_v33, %v59_v34  ;;  %v57_v38 = vsub.f32 %v35_v33, %v51_v36  ;;  %v66_v40 = vadd.f32 %v64_v32, %v62_v35 }
 0x142   :  { %v65_v39 = vmul.f32 0.1, %v61_v37  ;;  %v63_v41 = vmul.f32 0.9, %v57_v38  ;;  %v80_v43 = vsel %vm79_vm2, %v66_v40, 0.0 }
 0x144   :  { %v67_v42 = vadd.f32 %v65_v39, %v63_v41 }
 0x146   :  { %v81_v44 = vsel %vm79_vm2, %v67_v42, 0.0 }
 0x147   :  { %v82_v45 = vadd.f32 %v81_v44, %v80_v43 }
 0x149   :  { %83 = vadd.xlane.f32.xlu0 %v82_v45 }
 0x1d6   :  { %v84_v46 = vpop.xlane.xlu0 %83 }
 0x1d7   :  { %v85_v47 = vrot.slane %v84_v46, 4 }
 0x1d9   :  { %v86_v48 = vadd.f32 %v85_v47, %v84_v46 }
 0x1db   :  { %v87_v49 = vrot.slane %v86_v48, 2 }
 0x1dd   :  { %v88_v50 = vadd.f32 %v87_v49, %v86_v48 }
 0x1df   :  { %v89_v51 = vrot.slane %v88_v50, 1 }
 0x1e1   :  { %v90_v52 = vadd.f32 %v89_v51, %v88_v50 }
 0x1e3   :  { %107 = vpush %v90_v52 }
 0x214   :  { %s108_s0 = spop %107 }
 0x215   :  { %93 = sst [smem:[#allocation2]] %s108_s0 }
 0x216   :  { %130 = shalt.err (!%p127_p2)
}
 0x217   :  { %s134_s23 = smov [#allocation2]  }
 0x218   :  { %101 = dma.smem_to_hbm %s134_s23, 16, %s176_s2, [#allocation3]  }
 0x219   :  { %131 = dma.done.wait [#allocation3], 16  }
 0x21a   :  { %132 = vsyncadd [#allocation3], 4294967280 }
 0x21b   :  { %105 = sfence }
 0x21c   :  { %106 = vsyncpa [#allocation3], 1 }

</bundles_post_ra>
